<compile_context>
chip_gen: v7x
topology: tpu7x:2x2x1
jax: 0.10.0
libtpu: 0.0.40
codegen_flags: <defaults>
</compile_context>

<pallas_src>
import jax
import jax.numpy as jnp
from jax.experimental import pallas as pl
from jax.experimental.pallas import tpu as pltpu


# --------------------------------------------------------------------------
# Pallas kernel
# --------------------------------------------------------------------------
def _swish_kernel(sp_ref, x_ref, o_ref):
    """Fused Swish:  o = x * sigmoid(x * softplus(beta))  on one (tm, lane) tile."""
    sp = sp_ref[0]                                   # softplus(beta), SMEM scalar
    x = x_ref[...].astype(jnp.float32)               # in-register cast (no extra HBM pass)
    o_ref[...] = (x * jax.nn.sigmoid(x * sp)).astype(o_ref.dtype)   # VPU muls + EUP exp


# --------------------------------------------------------------------------
# Wrapper: lane-dense 2-D view, 1-D pipelined grid over rows
# --------------------------------------------------------------------------
def _round_up(n, m):
    return ((n + m - 1) // m) * m


_LANES = (1024, 512, 256, 128)     # lane-dense last dims (multiples of 128)
_ROW_TILES = (1024, 512, 256)      # preferred row tiles (multiples of 32, any fp dtype)


def swish(x, beta):
    """Elementwise Swish with learnable beta; accepts any shape / float dtype."""
    orig_shape, orig_dtype = x.shape, x.dtype
    total = int(x.size)

    # Lane width: largest candidate dividing the element count (avoids flat padding).
    lane = next((c for c in _LANES if total % c == 0), 128)
    rows = -(-total // lane)                         # ceil
    exact = rows * lane == total

    if exact and any(rows % t == 0 and rows // t >= 2 for t in _ROW_TILES):
        # Common case: perfect tiling, zero padding, fully pipelined multi-step grid.
        tm = next(t for t in _ROW_TILES if rows % t == 0 and rows // t >= 2)
        rows_pad = rows
    elif exact and rows <= 1024:
        # Small input: one full-array block (full dims are exempt from (8,128) tiling).
        tm, rows_pad = rows, rows
    else:
        # Correctness fallback for awkward sizes: pad the flat view (one extra copy).
        tm = min(512, _round_up(rows, 32))
        rows_pad = _round_up(rows, tm)

    grid = rows_pad // tm

    xf = x.reshape(-1)
    if rows_pad * lane != total:
        xf = jnp.pad(xf, (0, rows_pad * lane - total))
    xf = xf.reshape(rows_pad, lane)

    # Numerically stable softplus(beta), computed once, prefetched to SMEM.
    sp = jax.nn.softplus(jnp.asarray(beta, jnp.float32)).reshape(-1)[:1]

    out = pl.pallas_call(
        _swish_kernel,
        out_shape=jax.ShapeDtypeStruct((rows_pad, lane), orig_dtype),
        grid_spec=pltpu.PrefetchScalarGridSpec(
            num_scalar_prefetch=1,                   # sp -> SMEM before the grid runs
            grid=(grid,),
            in_specs=[pl.BlockSpec((tm, lane), lambda i, sp_ref: (i, 0))],
            out_specs=pl.BlockSpec((tm, lane), lambda i, sp_ref: (i, 0)),
        ),
        compiler_params=pltpu.CompilerParams(
            dimension_semantics=("parallel",),       # megacore sharding on v7x
            vmem_limit_bytes=32 * 1024 * 1024,       # headroom vs v7x's 64 MiB VMEM
        ),
    )(sp, xf)

    out = out.reshape(-1)
    if rows_pad * lane != total:
        out = out[:total]
    return out.reshape(orig_shape)


# --------------------------------------------------------------------------
if __name__ == "__main__":
    key = jax.random.PRNGKey(0)
    xkey, x2key = jax.random.split(key)

    # Small activation-like input: batch=2, channels=4, 16x16 spatial (NCHW).
    x = jax.random.normal(xkey, (2, 4, 16, 16), jnp.float32)
    beta = jnp.array([0.5], jnp.float32)             # matches nn.Parameter([0.5])

    y = swish(x, beta)
    jax.block_until_ready(y)

    # Pure-JAX reference check (same math as the PyTorch module).
    ref = x * jax.nn.sigmoid(x * jax.nn.softplus(beta[0]))
    assert y.shape == x.shape and y.dtype == x.dtype
    assert bool(jnp.all(jnp.isfinite(y)))
    assert bool(jnp.allclose(y, ref, atol=1e-6, rtol=1e-6))

    # Exercise the awkward-size (padding) fallback path as well.
    x2 = jax.random.normal(x2key, (3, 5, 7), jnp.float32)
    y2 = swish(x2, beta)
    jax.block_until_ready(y2)
    ref2 = x2 * jax.nn.sigmoid(x2 * jax.nn.softplus(beta[0]))
    assert y2.shape == x2.shape
    assert bool(jnp.allclose(y2, ref2, atol=1e-6, rtol=1e-6))

    print("KERNEL_OK")
</pallas_src>

<mosaic_0001>
module attributes {stable_mosaic.version = 11 : i64} {
  func.func @_swish_kernel(%arg0: i32, %arg1: memref<1xf32, #tpu.memory_space<smem>>, %arg2: memref<2x1024xf32, #tpu.memory_space<vmem>>, %arg3: memref<2x1024xf32, #tpu.memory_space<vmem>>) attributes {dimension_semantics = [#tpu.dimension_semantics<parallel>], iteration_bounds = array<i64: 1>, scalar_prefetch = 1 : i64, scratch_operands = 0 : i64, tpu.core_type = #tpu.core_type<tc>, window_params = [{transform_indices = @transform_0, window_bounds = array<i64: 2, 1024>}, {transform_indices = @transform_1, window_bounds = array<i64: 2, 1024>}]} {
    %c0 = arith.constant 0 : index
    %0 = memref.load %arg1[%c0] : memref<1xf32, #tpu.memory_space<smem>>
    %c0_0 = arith.constant 0 : index
    %c0_1 = arith.constant 0 : index
    %1 = vector.load %arg2[%c0_0, %c0_1] : memref<2x1024xf32, #tpu.memory_space<vmem>>, vector<2x1024xf32>
    %2 = vector.broadcast %0 : f32 to vector<2x1024xf32>
    %3 = arith.mulf %1, %2 : vector<2x1024xf32>
    %4 = arith.negf %3 : vector<2x1024xf32>
    %5 = math.exp %4 : vector<2x1024xf32>
    %cst = arith.constant 1.000000e+00 : f32
    %6 = vector.broadcast %cst : f32 to vector<2x1024xf32>
    %7 = arith.addf %6, %5 : vector<2x1024xf32>
    %8 = arith.divf %6, %7 : vector<2x1024xf32>
    %9 = arith.mulf %1, %8 : vector<2x1024xf32>
    %c0_2 = arith.constant 0 : index
    %c0_3 = arith.constant 0 : index
    %10 = vector.load %arg3[%c0_2, %c0_3] : memref<2x1024xf32, #tpu.memory_space<vmem>>, vector<2x1024xf32>
    tpu.vector_store %arg3[%c0_2, %c0_3], %9 {strides = array<i32>} : memref<2x1024xf32, #tpu.memory_space<vmem>>, vector<2x1024xf32>,
    return
  }
  func.func @transform_0(%arg0: i32, %arg1: memref<1xf32, #tpu.memory_space<smem>>) -> (i32, i32) {
    %c0_i32 = arith.constant 0 : i32
    %c0_i32_0 = arith.constant 0 : i32
    return %arg0, %c0_i32 : i32, i32
  }
  func.func @transform_1(%arg0: i32, %arg1: memref<1xf32, #tpu.memory_space<smem>>) -> (i32, i32) {
    %c0_i32 = arith.constant 0 : i32
    %c0_i32_0 = arith.constant 0 : i32
    return %arg0, %c0_i32 : i32, i32
  }
}

</mosaic_0001>

<bundles_post_ra>
// kernel: tpu_custom_call.1
= control target key start
LH: loop header
LB: loop body
LE: loop exit
PB: predicated region body
PF: predicated region fallthrough
CT: control target
= control target key end

     0   :  { %8 = vsyncpa [#allocation5], 0  ;;  %s164_s0 = inlined_call_operand.<no memory space> [shape: f32[1], index: 0, kind: input, shape index: {}]   ;;  %s165_s1 = inlined_call_operand.hbm [shape: f32[2,1024], index: 1, kind: input, shape index: {}]   ;;  %s166_s2 = inlined_call_operand.hbm [shape: f32[2,1024], index: 2, kind: output, shape index: {}]  }
   0x1   :  { %9 = vsyncpa [#allocation6], 0  ;;  %s120_s9 = smov [#allocation4]   ;;  %s72_s13 = scalar_lea.hbm %s165_s1, 256 }
   0x2   :  { %s16_s10 = sshll.u32 %s120_s9, 4  ;;  %p73_p0 = scmp.ne.s32.totalorder %s165_s1, %s72_s13  ;;  %s17_s10 = int_to_ptr.vmem [resolvable:$true] %s16_s10 }
   0x3   :  { %p76_p1 = scmp.lt.u32.totalorder %s72_s13, %s165_s1 }
   0x5   :  { %p78_p2 = pnand %p76_p1, %p73_p0 }
   0x7   :  { %81 = shalt.err (!%p78_p2)
}
   0x8   :  { %s82_s18 = scalar_lea.vmem %s17_s10, 256  ;;  %p87_p4 = scmp.lt.s32.totalorder %s17_s10, %s17_s10 }
   0x9   :  { %p83_p3 = scmp.ne.s32.totalorder %s17_s10, %s82_s18  ;;  %p88_p5 = scmp.lt.s32.totalorder %s82_s18, %s82_s18 }
   0xb   :  { %p89_p6 = por %p88_p5, %p87_p4 }
   0xd   :  { %p90_p7 = pnand %p89_p6, %p83_p3 }
   0xf   :  { %93 = shalt.err (!%p90_p7)
}
  0x10   :  { %19 = dma.hbm_to_vmem [thread:$0]  %s165_s1, 256, %s17_s10, [#allocation5]  }
  0x11   :  { %116 = dma.done.wait [#allocation5], 256  }
  0x12   :  { %117 = vsyncadd [#allocation5], 4294967040  ;;  %v26_v0 = vstv %s164_s0  ;;  %v24_v1 = vld [vmem:[#allocation4] sm:$0xff]  ;;  %v25_v2 = vld [vmem:[#allocation4 + $0x8] sm:$0xff]  ;;  %s121_s1 = smov [#allocation7]  }
  0x13   :  { %v27_v3 = vmul.f32 %v26_v0, %v24_v1  ;;  %v28_v4 = vmul.f32 %v26_v0, %v25_v2  ;;  %s51_s23 = sshll.u32 %s121_s1, 4  ;;  %s52_s23 = int_to_ptr.vmem [resolvable:$true] %s51_s23 }
  0x14   :  { %s94_s0 = scalar_lea.vmem %s52_s23, 256  ;;  %p99_p9 = scmp.lt.s32.totalorder %s52_s23, %s52_s23 }
  0x15   :  { %v60_v5 = vmul.f32 -1.442695, %v27_v3  ;;  %v61_v6 = vmul.f32 -1.442695, %v28_v4  ;;  %p95_p8 = scmp.ne.s32.totalorder %s52_s23, %s94_s0  ;;  %p100_p10 = scmp.lt.s32.totalorder %s94_s0, %s94_s0 }
  0x17   :  { %64 = vpow2.f32 %v60_v5  ;;  %p101_p11 = por %p100_p10, %p99_p9 }
  0x18   :  { %66 = vpow2.f32 %v61_v6 }
  0x19   :  { %p102_p12 = pnand %p101_p11, %p95_p8 }
  0x21   :  { %v65_v7 = vpop.eup %64 }
  0x22   :  { %v67_v8 = vpop.eup %66  ;;  %v35_v9 = vadd.f32 1.0, %v65_v7 }
  0x23   :  { %v36_v10 = vadd.f32 1.0, %v67_v8 }
  0x24   :  { %68 = vrcp.f32 %v35_v9 }
  0x25   :  { %70 = vrcp.f32 %v36_v10 }
  0x2e   :  { %v69_v11 = vpop.eup %68 }
  0x2f   :  { %v71_v12 = vpop.eup %70  ;;  %v41_v13 = vmul.f32 %v69_v11, %v24_v1 }
  0x30   :  { %v42_v14 = vmul.f32 %v71_v12, %v25_v2 }
  0x31   :  { %43 = vst [vmem:[#allocation7] sm:$0xff] %v41_v13 }
  0x32   :  { %44 = vst [vmem:[#allocation7 + $0x8] sm:$0xff] %v42_v14 }
  0x33   :  { %105 = shalt.err (!%p102_p12)
}
  0x34   :  { %s106_s26 = scalar_lea.hbm %s166_s2, 256 }
  0x35   :  { %p107_p13 = scmp.ne.s32.totalorder %s166_s2, %s106_s26  ;;  %p110_p0 = scmp.lt.u32.totalorder %s106_s26, %s166_s2 }
  0x37   :  { %p112_p1 = pnand %p110_p0, %p107_p13 }
  0x39   :  { %115 = shalt.err (!%p112_p1)
}
  0x3a   :  { %54 = dma.vmem_to_hbm [thread:$0]  %s52_s23, 256, %s166_s2, [#allocation6]  }
  0x3b   :  { %118 = dma.done.wait [#allocation6], 256  }
  0x3c   :  { %119 = vsyncadd [#allocation6], 4294967040 }
  0x3d   :  { %58 = vsyncpa [#allocation5], 1 }
  0x3e   :  { %59 = vsyncpa [#allocation6], 1 }

</bundles_post_ra>
